<compile_context>
chip_gen: v6e
topology: v6e:2x2x1
jax: 0.10.0
libtpu: 0.0.40
codegen_flags: <defaults>
</compile_context>

<pallas_src>
import functools

import jax
import jax.numpy as jnp
from jax.experimental import pallas as pl
from jax.experimental.pallas import tpu as pltpu

# Small instantiation of the module (constructor args).
ENCODING_DIM = 32
HIDDEN_SIZES = (64, 128, 256)
OUT_POINTS = 16
NUM_CLASSES = 5
OUT_DIM = 3 + NUM_CLASSES           # 8
OUT_FLAT = OUT_POINTS * OUT_DIM     # 128 -> lane-dense output tile


def _segmenter_kernel(x_ref, w1_ref, b1_ref, w2_ref, b2_ref,
                      w3_ref, b3_ref, w4_ref, b4_ref, o_ref, *, out_dim):
    # x_ref block is (TILE_B, E) bf16: the whole batch tile feeds one MXU
    # matmul stream per layer.  Accumulation is f32; hidden activations are
    # re-cast to bf16 so every matmul runs at native MXU rate.
    x = x_ref[...]

    h = jnp.dot(x, w1_ref[...], preferred_element_type=jnp.float32) + b1_ref[...]
    h = jnp.maximum(h, 0.0).astype(jnp.bfloat16)
    h = jnp.dot(h, w2_ref[...], preferred_element_type=jnp.float32) + b2_ref[...]
    h = jnp.maximum(h, 0.0).astype(jnp.bfloat16)
    h = jnp.dot(h, w3_ref[...], preferred_element_type=jnp.float32) + b3_ref[...]
    h = jnp.maximum(h, 0.0).astype(jnp.bfloat16)
    y = jnp.dot(h, w4_ref[...], preferred_element_type=jnp.float32) + b4_ref[...]

    # Selective sigmoid on the xyz channels of each point, done on the flat
    # (TILE_B, out_points*out_dim) layout.  The mask is a single (1, f_out)
    # lane-index vreg (bitwise mod when out_dim is a power of two) broadcast
    # by the select -- keeps the store a single lane-dense vst per tile with
    # no in-kernel reshape.
    f_out = y.shape[1]
    col = jax.lax.broadcasted_iota(jnp.int32, (1, f_out), 1)
    if out_dim & (out_dim - 1) == 0:
        is_xyz = (col & (out_dim - 1)) < 3
    else:
        is_xyz = (col % out_dim) < 3
    o_ref[...] = jnp.where(is_xyz, jax.nn.sigmoid(y), y)


def pc_segmenter(x, params, *, out_points=OUT_POINTS, num_classes=NUM_CLASSES,
                 tile_b=2048):
    """x: (B, encoding_dim) float32 -> (B, out_points, 3 + num_classes) f32."""
    w1, b1, w2, b2, w3, b3, w4, b4 = params
    B, E = x.shape
    out_dim = 3 + num_classes
    f_out = out_points * out_dim
    assert w4.shape[1] == f_out

    # ---- batch tiling -----------------------------------------------------
    # Large tiles amortize the per-grid-step overhead and keep the MXU fed.
    # On v7x the "parallel" batch axis only uses both TensorCores if there
    # are >= 2 grid steps, so split the batch in two whenever it is large
    # enough; tiny batches fall back to a single sublane-aligned block.
    tb = min(tile_b, B)
    if B >= 16 and B <= tb:          # would otherwise be a single grid step
        tb = -(-B // 2)              # ceil(B / 2)
    tb = max(8, ((tb + 7) // 8) * 8)  # sublane alignment
    pad = (-B) % tb
    if pad:
        x = jnp.pad(x, ((0, pad), (0, 0)))
    bp = B + pad
    grid = (bp // tb,)

    # bf16 inputs / weights, f32 biases + accumulation + output.
    x = x.astype(jnp.bfloat16)
    w1b, w2b, w3b, w4b = (w.astype(jnp.bfloat16) for w in (w1, w2, w3, w4))
    b1f, b2f, b3f, b4f = (b.astype(jnp.float32) for b in (b1, b2, b3, b4))

    def full_spec(a):
        # Whole-array block, constant index_map -> loaded once, VMEM-resident.
        return pl.BlockSpec(a.shape, lambda b, _n=a.ndim: (0,) * _n)

    h1, h2, h3 = w1.shape[1], w2.shape[1], w3.shape[1]
    flops = 2 * bp * (E * h1 + h1 * h2 + h2 * h3 + h3 * f_out)
    weight_bytes = int(sum(w.size * 2 for w in (w1b, w2b, w3b, w4b)))
    bias_bytes = int(sum(b.size * 4 for b in (b1f, b2f, b3f, b4f)))
    cost = pl.CostEstimate(
        flops=flops,
        transcendentals=bp * f_out,                    # sigmoid on every lane
        bytes_accessed=2 * bp * E + 4 * bp * f_out     # bf16 in, f32 out
                       + weight_bytes + bias_bytes,    # params counted once
    )

    out_flat = pl.pallas_call(
        functools.partial(_segmenter_kernel, out_dim=out_dim),
        out_shape=jax.ShapeDtypeStruct((bp, f_out), jnp.float32),
        grid_spec=pltpu.PrefetchScalarGridSpec(
            num_scalar_prefetch=0,
            grid=grid,
            in_specs=[
                pl.BlockSpec((tb, E), lambda b: (b, 0)),
                full_spec(w1b), full_spec(b1f),
                full_spec(w2b), full_spec(b2f),
                full_spec(w3b), full_spec(b3f),
                full_spec(w4b), full_spec(b4f),
            ],
            out_specs=pl.BlockSpec((tb, f_out), lambda b: (b, 0)),
        ),
        compiler_params=pltpu.CompilerParams(
            dimension_semantics=("parallel",),
            vmem_limit_bytes=48 * 1024 * 1024),
        cost_estimate=cost,
    )(x, w1b, b1f, w2b, b2f, w3b, b3f, w4b, b4f)

    return out_flat[:B].reshape(B, out_points, out_dim)


def init_params(key):
    """PyTorch nn.Linear init; weights stored transposed as (fan_in, fan_out)."""
    dims = (ENCODING_DIM,) + HIDDEN_SIZES + (OUT_FLAT,)
    ks = jax.random.split(key, 2 * (len(dims) - 1))
    params = []
    for i in range(len(dims) - 1):
        fan_in, fan_out = dims[i], dims[i + 1]
        scale = 1.0 / jnp.sqrt(fan_in)
        w = jax.random.uniform(ks[2 * i], (fan_in, fan_out), jnp.float32,
                               -scale, scale)
        b = jax.random.uniform(ks[2 * i + 1], (1, fan_out), jnp.float32,
                               -scale, scale)
        params += [w, b]
    return tuple(params)


def _reference_forward_f32(x, params, *, out_points=OUT_POINTS,
                           num_classes=NUM_CLASSES):
    w1, b1, w2, b2, w3, b3, w4, b4 = params
    h = jnp.maximum(x @ w1 + b1, 0.0)
    h = jnp.maximum(h @ w2 + b2, 0.0)
    h = jnp.maximum(h @ w3 + b3, 0.0)
    y = h @ w4 + b4
    y = y.reshape(x.shape[0], out_points, 3 + num_classes)
    return jnp.concatenate([jax.nn.sigmoid(y[:, :, :3]), y[:, :, 3:]], axis=2)


def _reference_forward_mixed(x, params, *, out_points=OUT_POINTS,
                             num_classes=NUM_CLASSES):
    """Same bf16-input / f32-accum mixed precision as the kernel."""
    w1, b1, w2, b2, w3, b3, w4, b4 = params
    bf = jnp.bfloat16

    def lin(a, w, b):
        return jnp.dot(a.astype(bf), w.astype(bf),
                       preferred_element_type=jnp.float32) + b

    h = jnp.maximum(lin(x, w1, b1), 0.0)
    h = jnp.maximum(lin(h, w2, b2), 0.0)
    h = jnp.maximum(lin(h, w3, b3), 0.0)
    y = lin(h, w4, b4)
    y = y.reshape(x.shape[0], out_points, 3 + num_classes)
    return jnp.concatenate([jax.nn.sigmoid(y[:, :, :3]), y[:, :, 3:]], axis=2)


if __name__ == "__main__":
    key = jax.random.PRNGKey(0)
    k_x, k_p = jax.random.split(key)
    B = 2
    x = jax.random.normal(k_x, (B, ENCODING_DIM), jnp.float32)
    params = init_params(k_p)

    out = pc_segmenter(x, params)
    out = jax.block_until_ready(out)
    assert out.shape == (B, OUT_POINTS, OUT_DIM)

    # Exact (same mixed precision as the kernel) and semantic (pure f32
    # module reference) checks.
    ref_mixed = _reference_forward_mixed(x, params)
    ref_f32 = _reference_forward_f32(x, params)
    assert jnp.allclose(out, ref_mixed, atol=1e-4, rtol=1e-4)
    assert jnp.allclose(out, ref_f32, atol=5e-2, rtol=5e-2)

    print("KERNEL_OK")
</pallas_src>

<mosaic_0001>
module attributes {stable_mosaic.version = 11 : i64} {
  func.func @_segmenter_kernel(%arg0: i32, %arg1: memref<8x32xbf16, #tpu.memory_space<vmem>>, %arg2: memref<32x64xbf16, #tpu.memory_space<vmem>>, %arg3: memref<1x64xf32, #tpu.memory_space<vmem>>, %arg4: memref<64x128xbf16, #tpu.memory_space<vmem>>, %arg5: memref<1x128xf32, #tpu.memory_space<vmem>>, %arg6: memref<128x256xbf16, #tpu.memory_space<vmem>>, %arg7: memref<1x256xf32, #tpu.memory_space<vmem>>, %arg8: memref<256x128xbf16, #tpu.memory_space<vmem>>, %arg9: memref<1x128xf32, #tpu.memory_space<vmem>>, %arg10: memref<8x128xf32, #tpu.memory_space<vmem>>) attributes {dimension_semantics = [#tpu.dimension_semantics<parallel>], iteration_bounds = array<i64: 1>, scalar_prefetch = 0 : i64, scratch_operands = 0 : i64, tpu.core_type = #tpu.core_type<tc>, window_params = [{transform_indices = @transform_0, window_bounds = array<i64: 8, 32>}, {pipeline_mode = #tpu.pipeline_mode<synchronous>, transform_indices = @transform_1, window_bounds = array<i64: 32, 64>}, {pipeline_mode = #tpu.pipeline_mode<synchronous>, transform_indices = @transform_2, window_bounds = array<i64: 1, 64>}, {pipeline_mode = #tpu.pipeline_mode<synchronous>, transform_indices = @transform_3, window_bounds = array<i64: 64, 128>}, {pipeline_mode = #tpu.pipeline_mode<synchronous>, transform_indices = @transform_4, window_bounds = array<i64: 1, 128>}, {pipeline_mode = #tpu.pipeline_mode<synchronous>, transform_indices = @transform_5, window_bounds = array<i64: 128, 256>}, {pipeline_mode = #tpu.pipeline_mode<synchronous>, transform_indices = @transform_6, window_bounds = array<i64: 1, 256>}, {pipeline_mode = #tpu.pipeline_mode<synchronous>, transform_indices = @transform_7, window_bounds = array<i64: 256, 128>}, {pipeline_mode = #tpu.pipeline_mode<synchronous>, transform_indices = @transform_8, window_bounds = array<i64: 1, 128>}, {transform_indices = @transform_9, window_bounds = array<i64: 8, 128>}]} {
    %c0 = arith.constant 0 : index
    %c0_0 = arith.constant 0 : index
    %0 = vector.load %arg1[%c0, %c0_0] : memref<8x32xbf16, #tpu.memory_space<vmem>>, vector<8x32xbf16>
    %c0_1 = arith.constant 0 : index
    %c0_2 = arith.constant 0 : index
    %1 = vector.load %arg2[%c0_1, %c0_2] : memref<32x64xbf16, #tpu.memory_space<vmem>>, vector<32x64xbf16>
    %cst = arith.constant dense<0.000000e+00> : vector<8x64xf32>
    %2 = tpu.matmul %0, %1, %cst {dimension_numbers = #tpu.dot_dimension_numbers<[1], [0], [0], [1], [0, 0, 1, 1], [], []>} : vector<8x32xbf16>, vector<32x64xbf16>, vector<8x64xf32> -> vector<8x64xf32>
    %c0_3 = arith.constant 0 : index
    %c0_4 = arith.constant 0 : index
    %3 = vector.load %arg3[%c0_3, %c0_4] : memref<1x64xf32, #tpu.memory_space<vmem>>, vector<1x64xf32>
    %4 = vector.broadcast %3 : vector<1x64xf32> to vector<8x64xf32>
    %5 = arith.addf %2, %4 : vector<8x64xf32>
    %cst_5 = arith.constant 0.000000e+00 : f32
    %6 = vector.broadcast %cst_5 : f32 to vector<8x64xf32>
    %7 = arith.maximumf %5, %6 : vector<8x64xf32>
    %8 = arith.truncf %7 : vector<8x64xf32> to vector<8x64xbf16>
    %c0_6 = arith.constant 0 : index
    %c0_7 = arith.constant 0 : index
    %9 = vector.load %arg4[%c0_6, %c0_7] : memref<64x128xbf16, #tpu.memory_space<vmem>>, vector<64x128xbf16>
    %cst_8 = arith.constant dense<0.000000e+00> : vector<8x128xf32>
    %10 = tpu.matmul %8, %9, %cst_8 {dimension_numbers = #tpu.dot_dimension_numbers<[1], [0], [0], [1], [0, 0, 1, 1], [], []>} : vector<8x64xbf16>, vector<64x128xbf16>, vector<8x128xf32> -> vector<8x128xf32>
    %c0_9 = arith.constant 0 : index
    %c0_10 = arith.constant 0 : index
    %11 = vector.load %arg5[%c0_9, %c0_10] : memref<1x128xf32, #tpu.memory_space<vmem>>, vector<1x128xf32>
    %12 = vector.broadcast %11 : vector<1x128xf32> to vector<8x128xf32>
    %13 = arith.addf %10, %12 : vector<8x128xf32>
    %cst_11 = arith.constant 0.000000e+00 : f32
    %14 = vector.broadcast %cst_11 : f32 to vector<8x128xf32>
    %15 = arith.maximumf %13, %14 : vector<8x128xf32>
    %16 = arith.truncf %15 : vector<8x128xf32> to vector<8x128xbf16>
    %c0_12 = arith.constant 0 : index
    %c0_13 = arith.constant 0 : index
    %17 = vector.load %arg6[%c0_12, %c0_13] : memref<128x256xbf16, #tpu.memory_space<vmem>>, vector<128x256xbf16>
    %cst_14 = arith.constant dense<0.000000e+00> : vector<8x256xf32>
    %18 = tpu.matmul %16, %17, %cst_14 {dimension_numbers = #tpu.dot_dimension_numbers<[1], [0], [0], [1], [0, 0, 1, 1], [], []>} : vector<8x128xbf16>, vector<128x256xbf16>, vector<8x256xf32> -> vector<8x256xf32>
    %c0_15 = arith.constant 0 : index
    %c0_16 = arith.constant 0 : index
    %19 = vector.load %arg7[%c0_15, %c0_16] : memref<1x256xf32, #tpu.memory_space<vmem>>, vector<1x256xf32>
    %20 = vector.broadcast %19 : vector<1x256xf32> to vector<8x256xf32>
    %21 = arith.addf %18, %20 : vector<8x256xf32>
    %cst_17 = arith.constant 0.000000e+00 : f32
    %22 = vector.broadcast %cst_17 : f32 to vector<8x256xf32>
    %23 = arith.maximumf %21, %22 : vector<8x256xf32>
    %24 = arith.truncf %23 : vector<8x256xf32> to vector<8x256xbf16>
    %c0_18 = arith.constant 0 : index
    %c0_19 = arith.constant 0 : index
    %25 = vector.load %arg8[%c0_18, %c0_19] : memref<256x128xbf16, #tpu.memory_space<vmem>>, vector<256x128xbf16>
    %cst_20 = arith.constant dense<0.000000e+00> : vector<8x128xf32>
    %26 = tpu.matmul %24, %25, %cst_20 {dimension_numbers = #tpu.dot_dimension_numbers<[1], [0], [0], [1], [0, 0, 1, 1], [], []>} : vector<8x256xbf16>, vector<256x128xbf16>, vector<8x128xf32> -> vector<8x128xf32>
    %c0_21 = arith.constant 0 : index
    %c0_22 = arith.constant 0 : index
    %27 = vector.load %arg9[%c0_21, %c0_22] : memref<1x128xf32, #tpu.memory_space<vmem>>, vector<1x128xf32>
    %28 = vector.broadcast %27 : vector<1x128xf32> to vector<8x128xf32>
    %29 = arith.addf %26, %28 : vector<8x128xf32>
    %30 = tpu.iota {dimensions = array<i32: 1>} : vector<1x128xi32>
    %c7_i32 = arith.constant 7 : i32
    %31 = vector.broadcast %c7_i32 : i32 to vector<1x128xi32>
    %32 = arith.andi %30, %31 : vector<1x128xi32>
    %c3_i32 = arith.constant 3 : i32
    %33 = vector.broadcast %c3_i32 : i32 to vector<1x128xi32>
    %34 = arith.cmpi slt, %32, %33 : vector<1x128xi32>
    %35 = arith.negf %29 : vector<8x128xf32>
    %36 = math.exp %35 : vector<8x128xf32>
    %cst_23 = arith.constant 1.000000e+00 : f32
    %37 = vector.broadcast %cst_23 : f32 to vector<8x128xf32>
    %38 = arith.addf %37, %36 : vector<8x128xf32>
    %39 = arith.divf %37, %38 : vector<8x128xf32>
    %40 = vector.shape_cast %34 : vector<1x128xi1> to vector<1x128xi1>
    %41 = vector.broadcast %40 : vector<1x128xi1> to vector<8x128xi1>
    %42 = arith.select %41, %39, %29 : vector<8x128xi1>, vector<8x128xf32>
    %c0_24 = arith.constant 0 : index
    %c0_25 = arith.constant 0 : index
    %43 = vector.load %arg10[%c0_24, %c0_25] : memref<8x128xf32, #tpu.memory_space<vmem>>, vector<8x128xf32>
    tpu.vector_store %arg10[%c0_24, %c0_25], %42 {strides = array<i32>} : memref<8x128xf32, #tpu.memory_space<vmem>>, vector<8x128xf32>,
    return
  }
  func.func @transform_0(%arg0: i32) -> (i32, i32) {
    %c0_i32 = arith.constant 0 : i32
    %c0_i32_0 = arith.constant 0 : i32
    return %arg0, %c0_i32 : i32, i32
  }
  func.func @transform_1(%arg0: i32) -> (i32, i32) {
    %c0_i32 = arith.constant 0 : i32
    %c0_i32_0 = arith.constant 0 : i32
    %c0_i32_1 = arith.constant 0 : i32
    return %c0_i32, %c0_i32_0 : i32, i32
  }
  func.func @transform_2(%arg0: i32) -> (i32, i32) {
    %c0_i32 = arith.constant 0 : i32
    %c0_i32_0 = arith.constant 0 : i32
    %c0_i32_1 = arith.constant 0 : i32
    return %c0_i32, %c0_i32_0 : i32, i32
  }
  func.func @transform_3(%arg0: i32) -> (i32, i32) {
    %c0_i32 = arith.constant 0 : i32
    %c0_i32_0 = arith.constant 0 : i32
    %c0_i32_1 = arith.constant 0 : i32
    return %c0_i32, %c0_i32_0 : i32, i32
  }
  func.func @transform_4(%arg0: i32) -> (i32, i32) {
    %c0_i32 = arith.constant 0 : i32
    %c0_i32_0 = arith.constant 0 : i32
    %c0_i32_1 = arith.constant 0 : i32
    return %c0_i32, %c0_i32_0 : i32, i32
  }
  func.func @transform_5(%arg0: i32) -> (i32, i32) {
    %c0_i32 = arith.constant 0 : i32
    %c0_i32_0 = arith.constant 0 : i32
    %c0_i32_1 = arith.constant 0 : i32
    return %c0_i32, %c0_i32_0 : i32, i32
  }
  func.func @transform_6(%arg0: i32) -> (i32, i32) {
    %c0_i32 = arith.constant 0 : i32
    %c0_i32_0 = arith.constant 0 : i32
    %c0_i32_1 = arith.constant 0 : i32
    return %c0_i32, %c0_i32_0 : i32, i32
  }
  func.func @transform_7(%arg0: i32) -> (i32, i32) {
    %c0_i32 = arith.constant 0 : i32
    %c0_i32_0 = arith.constant 0 : i32
    %c0_i32_1 = arith.constant 0 : i32
    return %c0_i32, %c0_i32_0 : i32, i32
  }
  func.func @transform_8(%arg0: i32) -> (i32, i32) {
    %c0_i32 = arith.constant 0 : i32
    %c0_i32_0 = arith.constant 0 : i32
    %c0_i32_1 = arith.constant 0 : i32
    return %c0_i32, %c0_i32_0 : i32, i32
  }
  func.func @transform_9(%arg0: i32) -> (i32, i32) {
    %c0_i32 = arith.constant 0 : i32
    %c0_i32_0 = arith.constant 0 : i32
    return %arg0, %c0_i32 : i32, i32
  }
}

</mosaic_0001>

<bundles_post_ra>
// kernel: tpu_custom_call.1
= control target key start
LH: loop header
LB: loop body
LE: loop exit
PB: predicated region body
PF: predicated region fallthrough
CT: control target
= control target key end

     0   :  { %14 = vsyncpa [#allocation3], 0  ;;  %s1001_s0 = inlined_call_operand.hbm [shape: bf16[8,32], index: 0, kind: input, shape index: {}]   ;;  %s1002_s1 = inlined_call_operand.hbm [shape: bf16[32,64], index: 1, kind: input, shape index: {}]   ;;  %s1003_s2 = inlined_call_operand.vmem [shape: f32[1,64], index: 2, kind: input, shape index: {}]   ;;  %s1004_s3 = inlined_call_operand.hbm [shape: bf16[64,128], index: 3, kind: input, shape index: {}]   ;;  %s1005_s4 = inlined_call_operand.vmem [shape: f32[1,128], index: 4, kind: input, shape index: {}]   ;;  %s1006_s5 = inlined_call_operand.hbm [shape: bf16[128,256], index: 5, kind: input, shape index: {}]   ;;  %s1007_s6 = inlined_call_operand.vmem [shape: f32[1,256], index: 6, kind: input, shape index: {}]   ;;  %s1008_s7 = inlined_call_operand.hbm [shape: bf16[256,128], index: 7, kind: input, shape index: {}]   ;;  %s1009_s8 = inlined_call_operand.vmem [shape: f32[1,128], index: 8, kind: input, shape index: {}]   ;;  %s1010_s9 = inlined_call_operand.hbm [shape: f32[8,128], index: 9, kind: output, shape index: {}]  }
   0x1   :  { %15 = vsyncpa [#allocation6], 0 }
   0x2   :  { %16 = vsyncpa [#allocation9], 0 }
   0x3   :  { %17 = vsyncpa [#allocation4], 0  ;;  %s899_s30 = smov [#allocation5]  }
   0x4   :  { %s33_s10 = sshll.u32 %s899_s30, 4  ;;  %s34_s10 = int_to_ptr.vmem [resolvable:$true] %s33_s10 }
   0x5   :  { %s779_s11 = scalar_lea.vmem %s34_s10, 256  ;;  %p784_p1 = scmp.lt.s32.totalorder %s34_s10, %s34_s10 }
   0x6   :  { %p780_p0 = scmp.ne.s32.totalorder %s34_s10, %s779_s11  ;;  %p785_p2 = scmp.lt.s32.totalorder %s779_s11, %s779_s11 }
   0x8   :  { %p786_p3 = por %p785_p2, %p784_p1 }
   0xa   :  { %p787_p4 = pnand %p786_p3, %p780_p0 }
   0xc   :  { %790 = shalt.err (!%p787_p4)
}
   0xd   :  { %s900_s12 = smov 64   ;;  %s901_s13 = smov 4  }
   0xe   :  { %39 = dma.hbm_to_vmem [thread:$0]  %s1002_s1, 256, %s34_s10, [#allocation6], %s900_s12, %s900_s12, %s901_s13  }
   0xf   :  { %s902_s16 = smov [#allocation8]  }
  0x10   :  { %s61_s17 = sshll.u32 %s902_s16, 4  ;;  %s62_s17 = int_to_ptr.vmem [resolvable:$true] %s61_s17 }
  0x11   :  { %s799_s18 = scalar_lea.vmem %s62_s17, 2048  ;;  %p804_p6 = scmp.lt.s32.totalorder %s62_s17, %s62_s17 }
  0x12   :  { %p800_p5 = scmp.ne.s32.totalorder %s62_s17, %s799_s18  ;;  %p805_p7 = scmp.lt.s32.totalorder %s799_s18, %s799_s18 }
  0x14   :  { %p806_p8 = por %p805_p7, %p804_p6 }
  0x16   :  { %p807_p9 = pnand %p806_p8, %p800_p5 }
  0x18   :  { %810 = shalt.err (!%p807_p9)
}
  0x19   :  { %s903_s19 = smov 128   ;;  %s904_s20 = smov 8  }
  0x1a   :  { %67 = dma.hbm_to_vmem [thread:$0]  %s1006_s5, 2048, %s62_s17, [#allocation9], %s903_s19, %s903_s19, %s904_s20  }
  0x1b   :  { %s905_s23 = smov [#allocation2]   ;;  %s906_s25 = smov [#allocation7]  }
  0x1c   :  { %s24_s24 = sshll.u32 %s905_s23, 4  ;;  %s47_s1 = sshll.u32 %s906_s25, 4  ;;  %s25_s24 = int_to_ptr.vmem [resolvable:$true] %s24_s24  ;;  %s48_s1 = int_to_ptr.vmem [resolvable:$true] %s47_s1 }
  0x1d   :  { %s819_s26 = scalar_lea.vmem %s25_s24, 64  ;;  %p824_p11 = scmp.lt.s32.totalorder %s25_s24, %s25_s24 }
  0x1e   :  { %p820_p10 = scmp.ne.s32.totalorder %s25_s24, %s819_s26  ;;  %p825_p12 = scmp.lt.s32.totalorder %s819_s26, %s819_s26 }
  0x20   :  { %p826_p13 = por %p825_p12, %p824_p11 }
  0x22   :  { %p827_p0 = pnand %p826_p13, %p820_p10 }
  0x24   :  { %830 = shalt.err (!%p827_p0)
}
  0x25   :  { %27 = dma.hbm_to_vmem [thread:$0]  %s1001_s0, 64, %s25_s24, [#allocation3]  }
  0x26   :  { %s839_s29 = scalar_lea.vmem %s48_s1, 512  ;;  %p844_p2 = scmp.lt.s32.totalorder %s48_s1, %s48_s1 }
  0x27   :  { %p840_p1 = scmp.ne.s32.totalorder %s48_s1, %s839_s29  ;;  %p845_p3 = scmp.lt.s32.totalorder %s839_s29, %s839_s29 }
  0x29   :  { %p846_p4 = por %p845_p3, %p844_p2 }
  0x2b   :  { %p847_p5 = pnand %p846_p4, %p840_p1 }
  0x2d   :  { %850 = shalt.err (!%p847_p5)
}
  0x2e   :  { %53 = dma.hbm_to_vmem [thread:$0]  %s1004_s3, 512, %s48_s1, [#allocation6], %s900_s12, %s900_s12, %s901_s13  }
  0x2f   :  { %s907_s10 = smov [#allocation10]  }
  0x30   :  { %s75_s11 = sshll.u32 %s907_s10, 4  ;;  %s76_s11 = int_to_ptr.vmem [resolvable:$true] %s75_s11 }
  0x31   :  { %s859_s14 = scalar_lea.vmem %s76_s11, 2048  ;;  %p864_p7 = scmp.lt.s32.totalorder %s76_s11, %s76_s11 }
  0x32   :  { %p860_p6 = scmp.ne.s32.totalorder %s76_s11, %s859_s14  ;;  %p865_p8 = scmp.lt.s32.totalorder %s859_s14, %s859_s14 }
  0x34   :  { %p866_p9 = por %p865_p8, %p864_p7 }
  0x36   :  { %p867_p10 = pnand %p866_p9, %p860_p6 }
  0x38   :  { %870 = shalt.err (!%p867_p10)
}
  0x39   :  { %81 = dma.hbm_to_vmem [thread:$0]  %s1008_s7, 2048, %s76_s11, [#allocation9], %s900_s12, %s900_s12, %s901_s13  }
  0x3a   :  { %891 = dma.done.wait [#allocation3], 64  }
  0x3b   :  { %892 = vsyncadd [#allocation3], 4294967232 }
  0x3c   :  { %893 = dma.done.wait [#allocation6], 768  }
  0x3d   :  { %894 = vsyncadd [#allocation6], 4294966528 }
  0x3e   :  { %895 = dma.done.wait [#allocation9], 4096  }
  0x3f   :  { %896 = vsyncadd [#allocation9], 4294963200  ;;  %v908_v0 = vmov 0.0   ;;  %vm909_vm0 = vmmov 0   ;;  %v721_v1 = vld [vmem:[#allocation5 + $0x8] sm:$0xff]   ;;  %v722_v2 = vld [vmem:[#allocation5] sm:$0xff]   ;;  %v273_v57 = vlaneseq }
  0x40   :  { %688 = vmatprep.subr.bf16.mxu0 %v908_v0  ;;  %692 = vmatprep.mubr.msk.bf16.mxu0 %vm909_vm0, %v908_v0  ;;  %v723_v3 = vld [vmem:[#allocation7 + $0x18] sm:$0xff]   ;;  %v100_v4 = vld [vmem:[#allocation2] sm:$0xf]  ;;  %v724_v5 = vld [vmem:[#allocation7 + $0x10] sm:$0xff]   ;;  %vm124_vm1 = vcmask 261120   ;;  %vm209_vm2 = vcmask 523264  }
  0x41   :  { %696 = vmatprep.subr.bf16.mxu1 %v908_v0  ;;  %704 = vmatprep.mubr.msk.bf16.mxu1 %vm909_vm0, %v908_v0  ;;  %v725_v6 = vld [vmem:[#allocation7 + $0x8] sm:$0xff]   ;;  %v726_v7 = vld [vmem:[#allocation7] sm:$0xff]   ;;  %v727_v8 = vld [vmem:[#allocation8 + $0x70] ss:$8 sps:$4 sm:$0xff]   ;;  %v910_v32 = vmov 0   ;;  %v274_v58 = vshrl.u32 %v273_v57, 7 }
  0x42   :  { %689 = vmatpush3.bf16.msra.mxu0 %v721_v1  ;;  %697 = vmatpush3.bf16.msra.mxu1 %v723_v3  ;;  %v729_v9 = vld [vmem:[#allocation8 + $0x74] ss:$8 sps:$4 sm:$0xff]   ;;  %v732_v10 = vld [vmem:[#allocation8 + $0x64] ss:$8 sps:$4 sm:$0xff]   ;;  %v730_v11 = vld [vmem:[#allocation8 + $0x60] ss:$8 sps:$4 sm:$0xff]  }
  0x43   :  { %690 = vmatprep.subr.bf16.mxu0 %v908_v0  ;;  %698 = vmatprep.subr.bf16.mxu1 %v908_v0  ;;  %v735_v12 = vld [vmem:[#allocation8 + $0x54] ss:$8 sps:$4 sm:$0xff]   ;;  %v733_v13 = vld [vmem:[#allocation8 + $0x50] ss:$8 sps:$4 sm:$0xff]   ;;  %v738_v14 = vld [vmem:[#allocation8 + $0x44] ss:$8 sps:$4 sm:$0xff]  }
  0x44   :  { %v736_v15 = vld [vmem:[#allocation8 + $0x40] ss:$8 sps:$4 sm:$0xff]   ;;  %v741_v16 = vld [vmem:[#allocation8 + $0x34] ss:$8 sps:$4 sm:$0xff]   ;;  %v739_v17 = vld [vmem:[#allocation8 + $0x30] ss:$8 sps:$4 sm:$0xff]  }
  0x45   :  { %v744_v18 = vld [vmem:[#allocation8 + $0x24] ss:$8 sps:$4 sm:$0xff]   ;;  %v742_v19 = vld [vmem:[#allocation8 + $0x20] ss:$8 sps:$4 sm:$0xff]   ;;  %v747_v20 = vld [vmem:[#allocation8 + $0x14] ss:$8 sps:$4 sm:$0xff]  }
  0x46   :  { %691 = vmatpush3.bf16.msra.mxu0 %v722_v2  ;;  %699 = vmatpush3.bf16.msra.mxu1 %v724_v5  ;;  %v745_v21 = vld [vmem:[#allocation8 + $0x10] ss:$8 sps:$4 sm:$0xff]   ;;  %v614_v22 = vld [vmem:[%s1003_s2] ss:$0 sm:$0xff]  ;;  %v748_v31 = vld [vmem:[#allocation8] ss:$8 sps:$4 sm:$0xff]  }
  0x47   :  { %700 = vmatprep.subr.bf16.mxu1 %v908_v0  ;;  %363 = vmatprep.subr.bf16.mxu0 %v729_v9  ;;  %v750_v30 = vld [vmem:[#allocation8 + $0x4] ss:$8 sps:$4 sm:$0xff]   ;;  %v751_v33 = vld [vmem:[#allocation10 + $0x78] sm:$0xff]   ;;  %v753_v35 = vld [vmem:[#allocation10 + $0x70] sm:$0xff]   ;;  %v275_v59 = vsub.s32 0, %v274_v58  ;;  %v279_v61 = vsub.s32 1, %v274_v58 }
  0x48   :  { %v752_v34 = vld [vmem:[#allocation10 + $0x38] sm:$0xff]   ;;  %v754_v36 = vld [vmem:[#allocation10 + $0x30] sm:$0xff]   ;;  %v755_v37 = vld [vmem:[#allocation10 + $0x68] sm:$0xff]  }
  0x49   :  { %693 = vmatmul.mubr.msk.bf16.vlgmr.msra.gmra.mxu0 %vm124_vm1, %v100_v4  ;;  %v756_v38 = vld [vmem:[#allocation10 + $0x28] sm:$0xff]   ;;  %v757_v39 = vld [vmem:[#allocation10 + $0x60] sm:$0xff]   ;;  %v759_v41 = vld [vmem:[#allocation10 + $0x58] sm:$0xff]  }
  0x4a   :  { %701 = vmatpush3.bf16.msra.mxu1 %v725_v6  ;;  %364 = vmatpush1.bf16.msra.mxu0 %v727_v8  ;;  %v758_v40 = vld [vmem:[#allocation10 + $0x20] sm:$0xff]   ;;  %v760_v42 = vld [vmem:[#allocation10 + $0x18] sm:$0xff]   ;;  %v761_v43 = vld [vmem:[#allocation10 + $0x50] sm:$0xff]  }
  0x4b   :  { %702 = vmatprep.subr.bf16.mxu1 %v908_v0  ;;  %365 = vmatprep.subr.bf16.mxu0 %v732_v10  ;;  %v762_v44 = vld [vmem:[#allocation10 + $0x10] sm:$0xff]   ;;  %v618_v45 = vld [vmem:[%s1005_s4] ss:$0 sm:$0xff]  ;;  %v765_v55 = vld [vmem:[#allocation10 + $0x40] sm:$0xff]  }
  0x4c   :  { %395 = vmatprep.mubr.bf16.mxu0 %v910_v32  ;;  %v763_v53 = vld [vmem:[#allocation10 + $0x48] sm:$0xff]   ;;  %v766_v56 = vld [vmem:[#allocation10] sm:$0xff]  }
  0x4d   :  { %v764_v54 = vld [vmem:[#allocation10 + $0x8] sm:$0xff]  }
  0x4e   :  { %703 = vmatpush3.bf16.msra.mxu1 %v726_v7  ;;  %366 = vmatpush1.bf16.msra.mxu0 %v730_v11  ;;  %v271_v60 = vld [vmem:[%s1007_s6] sm:$0x3]  ;;  %s911_s6 = smov [#allocation11]  }
  0x4f   :  { %367 = vmatprep.subr.bf16.mxu0 %v735_v12  ;;  %666 = vmatprep.subr.bf16.mxu1 %v751_v33  ;;  %v276_v62 = vrot.slane %v271_v60, %v275_v59  ;;  %v280_v63 = vrot.slane %v271_v60, %v279_v61  ;;  %v640_v11 = vld [vmem:[%s1009_s8] ss:$0 sm:$0xff]  ;;  %s603_s18 = sshll.u32 %s911_s6, 4  ;;  %s604_s18 = int_to_ptr.vmem [resolvable:$true] %s603_s18 }
  0x50   :  { %s871_s8 = scalar_lea.vmem %s604_s18, 128  ;;  %p876_p12 = scmp.lt.s32.totalorder %s604_s18, %s604_s18 }
  0x51   :  { %p872_p11 = scmp.ne.s32.totalorder %s604_s18, %s871_s8  ;;  %p877_p13 = scmp.lt.s32.totalorder %s871_s8, %s871_s8 }
  0x52   :  { %368 = vmatpush1.bf16.msra.mxu0 %v733_v13 }
  0x53   :  { %369 = vmatprep.subr.bf16.mxu0 %v738_v14  ;;  %p878_p0 = por %p877_p13, %p876_p12 }
  0x55   :  { %p879_p1 = pnand %p878_p0, %p872_p11 }
  0x56   :  { %370 = vmatpush1.bf16.msra.mxu0 %v736_v15 }
  0x57   :  { %371 = vmatprep.subr.bf16.mxu0 %v741_v16 }
  0x5a   :  { %372 = vmatpush1.bf16.msra.mxu0 %v739_v17 }
  0x5b   :  { %373 = vmatprep.subr.bf16.mxu0 %v744_v18 }
  0x5e   :  { %374 = vmatpush1.bf16.msra.mxu0 %v742_v19 }
  0x5f   :  { %375 = vmatprep.subr.bf16.mxu0 %v747_v20  ;;  %v584_v20 = vand.u32 127, %v273_v57 }
  0x62   :  { %376 = vmatpush1.bf16.msra.mxu0 %v745_v21  ;;  %v585_v21 = vand.u32 7, %v584_v20 }
  0x63   :  { %377 = vmatprep.subr.bf16.mxu0 %v750_v30 }
  0x64   :  { %vm586_vm3 = vcmp.lt.s32.totalorder %v585_v21, 3 }
  0x66   :  { %378 = vmatpush1.bf16.msra.mxu0 %v748_v31 }
 0x109   :  { %v162_v23 = vpop.f32.mrf.mxu0 }
 0x10a   :  { %v163_v24 = vadd.f32 %v614_v22, %v162_v23 }
 0x10b   :  { %v694_v25 = vpop.f32.mrf.mxu0 }
 0x10c   :  { %v168_v26 = vmax.f32 %v163_v24, 0.0 }
 0x10d   :  { %v165_v27 = vpop.f32.mrf.mxu0 }
 0x10e   :  { %v169_v28 = vpack.c.bf16 %v168_v26, %v168_v26 }
 0x10f   :  { %v695_v29 = vpop.f32.mrf.mxu0 }
 0x110   :  { %705 = vmatmul.mubr.msk.bf16.vlgmr.msra.gmra.mxu1 %vm209_vm2, %v169_v28 }
 0x111   :  { %667 = vmatpush3.bf16.msra.mxu1 %v752_v34 }
 0x112   :  { %668 = vmatprep.subr.bf16.mxu1 %v753_v35 }
 0x115   :  { %669 = vmatpush3.bf16.msra.mxu1 %v754_v36 }
 0x116   :  { %670 = vmatprep.subr.bf16.mxu1 %v755_v37 }
 0x119   :  { %671 = vmatpush3.bf16.msra.mxu1 %v756_v38 }
 0x11a   :  { %672 = vmatprep.subr.bf16.mxu1 %v757_v39 }
 0x11d   :  { %673 = vmatpush3.bf16.msra.mxu1 %v758_v40 }
 0x11e   :  { %674 = vmatprep.subr.bf16.mxu1 %v759_v41 }
 0x121   :  { %675 = vmatpush3.bf16.msra.mxu1 %v760_v42 }
 0x122   :  { %676 = vmatprep.subr.bf16.mxu1 %v761_v43 }
 0x125   :  { %677 = vmatpush3.bf16.msra.mxu1 %v762_v44 }
 0x126   :  { %678 = vmatprep.subr.bf16.mxu1 %v763_v53 }
 0x129   :  { %679 = vmatpush3.bf16.msra.mxu1 %v764_v54 }
 0x12a   :  { %680 = vmatprep.subr.bf16.mxu1 %v765_v55 }
 0x12d   :  { %681 = vmatpush3.bf16.msra.mxu1 %v766_v56 }
 0x1d0   :  { %v247_v46 = vpop.f32.mrf.mxu1 }
 0x1d1   :  { %v248_v47 = vadd.f32 %v618_v45, %v247_v46 }
 0x1d2   :  { %v706_v48 = vpop.f32.mrf.mxu1 }
 0x1d3   :  { %v253_v49 = vmax.f32 %v248_v47, 0.0 }
 0x1d4   :  { %v250_v50 = vpop.f32.mrf.mxu1 }
 0x1d5   :  { %v254_v51 = vpack.c.bf16 %v253_v49, %v253_v49 }
 0x1d6   :  { %v707_v52 = vpop.f32.mrf.mxu1 }
 0x1d7   :  { %396 = vmatmul.mubr.bf16.vlgmr.msra.gmra.mxu0 %v254_v51 }
 0x297   :  { %v397_v0 = vpop.f32.mrf.mxu0 }
 0x298   :  { %v398_v1 = vadd.f32 %v397_v0, %v276_v62 }
 0x299   :  { %v399_v2 = vpop.f32.mrf.mxu0 }
 0x29a   :  { %v400_v3 = vadd.f32 %v399_v2, %v280_v63  ;;  %v404_v4 = vmax.f32 %v398_v1, 0.0 }
 0x29b   :  { %v401_v5 = vpop.f32.mrf.mxu0 }
 0x29c   :  { %v405_v6 = vmax.f32 %v400_v3, 0.0  ;;  %v406_v9 = vpack.c.bf16 %v404_v4, %v404_v4 }
 0x29d   :  { %v402_v7 = vpop.f32.mrf.mxu0 }
 0x29e   :  { %v407_v8 = vpack.c.bf16 %v405_v6, %v405_v6 }
 0x2a0   :  { %575 = vmatprep.mubr.bf16.mxu1 %v407_v8 }
 0x2a1   :  { %576 = vmatmul.mubr.bf16.vlgmr.msra.gmra.mxu1 %v406_v9 }
 0x361   :  { %v682_v10 = vpop.f32.mrf.mxu1 }
 0x363   :  { %v683_v12 = vpop.f32.mrf.mxu1 }
 0x364   :  { %v684_v13 = vadd.f32 %v683_v12, %v682_v10 }
 0x365   :  { %v685_v14 = vpop.f32.mrf.mxu1 }
 0x366   :  { %v578_v15 = vadd.f32 %v684_v13, %v640_v11 }
 0x367   :  { %v686_v16 = vpop.f32.mrf.mxu1 }
 0x368   :  { %v657_v17 = vmul.f32 -1.442695, %v578_v15 }
 0x36a   :  { %767 = vpow2.f32 %v657_v17 }
 0x377   :  { %v768_v18 = vpop.eup %767 }
 0x378   :  { %v590_v19 = vadd.f32 1.0, %v768_v18 }
 0x37a   :  { %769 = vrcp.f32 %v590_v19 }
 0x387   :  { %v770_v22 = vpop.eup %769 }
 0x388   :  { %v595_v23 = vsel %vm586_vm3, %v770_v22, %v578_v15 }
 0x389   :  { %596 = vst [vmem:[#allocation11] sm:$0xff] %v595_v23 }
 0x38a   :  { %882 = shalt.err (!%p879_p1)
}
 0x38b   :  { %606 = dma.vmem_to_hbm [thread:$0]  %s604_s18, 128, %s1010_s9, [#allocation4]  }
 0x38c   :  { %897 = dma.done.wait [#allocation4], 128  }
 0x38d   :  { %898 = vsyncadd [#allocation4], 4294967168 }
 0x38e   :  { %610 = vsyncpa [#allocation3], 1 }
 0x38f   :  { %611 = vsyncpa [#allocation6], 1 }
 0x390   :  { %612 = vsyncpa [#allocation9], 1 }
 0x391   :  { %613 = vsyncpa [#allocation4], 1 }

</bundles_post_ra>
